<compile_context>
chip_gen: v7x
topology: tpu7x:2x2x1
jax: 0.10.0
libtpu: 0.0.40
codegen_flags: <defaults>
</compile_context>

<pallas_src>
import jax
import jax.numpy as jnp
from jax.experimental import pallas as pl
from jax.experimental.pallas import tpu as pltpu


def _round_up(x, m):
    return ((x + m - 1) // m) * m


def _physical_vmem_bytes():
    """Per-core VMEM capacity; falls back to the smallest (v7x, 64 MiB)."""
    try:
        info = pltpu.get_tpu_info()
        cap = getattr(info, "vmem_capacity_bytes", None)
        if cap:
            return int(cap)
    except Exception:
        pass
    return 64 << 20


def _row_align(dtype):
    # Sublane packing: 8 rows/vreg for 32-bit, 16 for bf16, 32 for int8/fp8.
    return max(8, 32 // jnp.dtype(dtype).itemsize)


def _vmem_estimate(tn, d_in, h, d_out, hk, in_bytes, out_bytes, x_bufs=2):
    """Working-set estimate (bytes) for one grid step.

    Resident weight/bias blocks counted at 2x (Pallas double-buffers every
    input BlockSpec, even with a constant index_map); streamed x/out blocks at
    their pipeline depth; plus the in-kernel f32 temporaries.
    """
    resident = 2 * ((d_in * h + h * d_out) * in_bytes + (h + d_out) * 4)
    streamed = x_bufs * tn * d_in * in_bytes + 2 * tn * d_out * out_bytes
    # f32 h chunk + its compute-dtype cast copy + f32 y accumulator.
    temps = tn * hk * (4 + in_bytes) + tn * d_out * 4
    return resident + streamed + temps


def _pick_row_tile(n, d_in, h, d_out, hk, in_bytes, out_bytes,
                   budget_bytes, align, cap, x_bufs=2):
    """Largest row tile (multiple of `align`, <= cap) fitting the VMEM budget."""
    if n <= align:
        return n  # single (possibly partial) block; full-dim block is allowed
    tn = min(cap, _round_up(n, align))
    while tn > align and _vmem_estimate(
            tn, d_in, h, d_out, hk, in_bytes, out_bytes, x_bufs) > budget_bytes:
        tn -= align
    return max(align, tn)


def _make_kernel(h_total, h_chunk):
    """Kernel body.  H is processed in compile-time chunks so the f32 `h`
    intermediate stays bounded even for large hidden sizes."""
    n_chunks = -(-h_total // h_chunk)
    # TODO(synk): for very large n_chunks switch this static unroll to a
    # lax.fori_loop (or an 'arbitrary' grid axis with a VMEM accumulator) to
    # keep code size and live ranges bounded.

    def kernel(x_ref, w1_ref, b1_ref, w2_ref, b2_ref, o_ref):
        x = x_ref[...]
        acc = None
        for c in range(n_chunks):
            lo = c * h_chunk
            hi = min(h_total, lo + h_chunk)
            # First matmul on the MXU with f32 accumulation; bias add + ReLU
            # stay in f32 on the VPU (v5e has no bf16 VALU path).
            hc = jnp.dot(x, w1_ref[:, lo:hi],
                         preferred_element_type=jnp.float32)
            hc = jnp.maximum(hc + b1_ref[:, lo:hi], 0.0)      # .clamp(min=0)
            yc = jnp.dot(hc.astype(w2_ref.dtype), w2_ref[lo:hi, :],
                         preferred_element_type=jnp.float32)
            acc = yc if acc is None else acc + yc
        o_ref[...] = (acc + b2_ref[...]).astype(o_ref.dtype)

    return kernel


def two_layer_net(x, w1, b1, w2, b2, *, compute_dtype=None, out_dtype=None,
                  row_tile=None, h_chunk=1024, x_buffers=None):
    """y = relu(x @ w1 + b1) @ w2 + b2.

    x: [N, D_in], w1: [D_in, H], b1: [H], w2: [H, D_out], b2: [D_out].
    """
    N, D_in = x.shape
    H = w1.shape[1]
    D_out = w2.shape[1]

    compute_dtype = jnp.dtype(compute_dtype or x.dtype)
    out_dtype = jnp.dtype(out_dtype or compute_dtype)
    in_bytes = compute_dtype.itemsize
    out_bytes = out_dtype.itemsize

    x_c = x.astype(compute_dtype)
    w1_c = w1.astype(compute_dtype)
    w2_c = w2.astype(compute_dtype)
    b1_c = b1.reshape(1, -1).astype(jnp.float32)
    b2_c = b2.reshape(1, -1).astype(jnp.float32)

    hk = min(H, h_chunk)

    # Generation-aware VMEM budget: ~3/4 of physical per-core VMEM
    # (48 MiB on v7x's 64 MiB/TC, 96 MiB on v5e/v6e's 128 MiB).
    physical = _physical_vmem_bytes()
    budget = (physical * 3) // 4
    cap = 1024 if physical >= (96 << 20) else 512   # larger row tiles on v5e/v6e
    align = _row_align(compute_dtype)
    x_bufs = x_buffers if x_buffers else 2

    tn = row_tile or _pick_row_tile(N, D_in, H, D_out, hk, in_bytes, out_bytes,
                                    budget, align, cap, x_bufs)

    # Explicit scoped-VMEM limit from the real working set + headroom.
    # (v5e's default scoped limit is only 16 MiB; always pass it explicitly.)
    est = _vmem_estimate(tn, D_in, H, D_out, hk, in_bytes, out_bytes, x_bufs)
    vmem_limit = int(min(physical, max(32 << 20, est * 3 // 2 + (4 << 20))))

    x_spec_kwargs = {}
    if x_buffers is not None and x_buffers != 2:
        # Deeper prefetch on the x stream if xprof shows exposed DMA.
        x_spec_kwargs["pipeline_mode"] = pl.Buffered(x_buffers)

    y = pl.pallas_call(
        _make_kernel(H, hk),
        out_shape=jax.ShapeDtypeStruct((N, D_out), out_dtype),
        grid=(pl.cdiv(N, tn),),
        in_specs=[
            pl.BlockSpec((tn, D_in), lambda i: (i, 0), **x_spec_kwargs),  # x: streamed
            pl.BlockSpec((D_in, H), lambda i: (0, 0)),      # w1: VMEM-resident
            pl.BlockSpec((1, H), lambda i: (0, 0)),         # b1: VMEM-resident
            pl.BlockSpec((H, D_out), lambda i: (0, 0)),     # w2: VMEM-resident
            pl.BlockSpec((1, D_out), lambda i: (0, 0)),     # b2: VMEM-resident
        ],
        out_specs=pl.BlockSpec((tn, D_out), lambda i: (i, 0)),
        compiler_params=pltpu.CompilerParams(
            # TODO(synk): on v7x verify via xprof that both TensorCores are
            # busy; if only one TC runs, switch this axis to pltpu.CORE_PARALLEL.
            dimension_semantics=("parallel",),
            vmem_limit_bytes=vmem_limit,
        ),
    )(x_c, w1_c, b1_c, w2_c, b2_c)
    return y


if __name__ == "__main__":
    # Small shapes consistent with the module's forward: x is [N, D_in].
    N, D_in, H, D_out = 64, 16, 32, 8

    key = jax.random.PRNGKey(0)
    kx, kw1, kb1, kw2, kb2 = jax.random.split(key, 5)

    x = jax.random.normal(kx, (N, D_in), dtype=jnp.float32)

    # Deterministic init mimicking torch.nn.Linear: U(-1/sqrt(fan_in), ...).
    bound1 = 1.0 / (D_in ** 0.5)
    w1 = jax.random.uniform(kw1, (D_in, H), jnp.float32, -bound1, bound1)
    b1 = jax.random.uniform(kb1, (H,), jnp.float32, -bound1, bound1)
    bound2 = 1.0 / (H ** 0.5)
    w2 = jax.random.uniform(kw2, (H, D_out), jnp.float32, -bound2, bound2)
    b2 = jax.random.uniform(kb2, (D_out,), jnp.float32, -bound2, bound2)

    y_ref = jnp.maximum(x @ w1 + b1[None, :], 0.0) @ w2 + b2[None, :]

    # f32 path (reference semantics).
    y = two_layer_net(x, w1, b1, w2, b2, compute_dtype=jnp.float32)
    jax.block_until_ready(y)
    assert y.shape == (N, D_out) and y.dtype == jnp.float32
    assert jnp.allclose(y, y_ref, atol=1e-5, rtol=1e-5)

    # H-chunked path (same semantics; bounds the f32 h intermediate).
    y_chunk = two_layer_net(x, w1, b1, w2, b2, compute_dtype=jnp.float32,
                            h_chunk=16)
    jax.block_until_ready(y_chunk)
    assert jnp.allclose(y_chunk, y_ref, atol=1e-5, rtol=1e-5)

    # bf16 inputs, f32 MXU accumulation, bf16 output (streamed-traffic mode).
    y_bf16 = two_layer_net(x, w1, b1, w2, b2, compute_dtype=jnp.bfloat16)
    jax.block_until_ready(y_bf16)
    assert y_bf16.dtype == jnp.bfloat16
    xb, w1b, w2b = (a.astype(jnp.bfloat16).astype(jnp.float32)
                    for a in (x, w1, w2))
    h_ref = jnp.maximum(xb @ w1b + b1[None, :], 0.0)
    h_ref = h_ref.astype(jnp.bfloat16).astype(jnp.float32)
    y_ref_bf16 = h_ref @ w2b + b2[None, :]
    assert jnp.allclose(y_bf16.astype(jnp.float32), y_ref_bf16,
                        atol=3e-2, rtol=3e-2)

    print("KERNEL_OK")
</pallas_src>

<mosaic_0001>
module attributes {stable_mosaic.version = 11 : i64} {
  func.func @kernel(%arg0: i32, %arg1: memref<64x16xf32, #tpu.memory_space<vmem>>, %arg2: memref<16x32xf32, #tpu.memory_space<vmem>>, %arg3: memref<1x32xf32, #tpu.memory_space<vmem>>, %arg4: memref<32x8xf32, #tpu.memory_space<vmem>>, %arg5: memref<1x8xf32, #tpu.memory_space<vmem>>, %arg6: memref<64x8xf32, #tpu.memory_space<vmem>>) attributes {dimension_semantics = [#tpu.dimension_semantics<parallel>], iteration_bounds = array<i64: 1>, scalar_prefetch = 0 : i64, scratch_operands = 0 : i64, tpu.core_type = #tpu.core_type<tc>, window_params = [{transform_indices = @transform_0, window_bounds = array<i64: 64, 16>}, {pipeline_mode = #tpu.pipeline_mode<synchronous>, transform_indices = @transform_1, window_bounds = array<i64: 16, 32>}, {pipeline_mode = #tpu.pipeline_mode<synchronous>, transform_indices = @transform_2, window_bounds = array<i64: 1, 32>}, {pipeline_mode = #tpu.pipeline_mode<synchronous>, transform_indices = @transform_3, window_bounds = array<i64: 32, 8>}, {pipeline_mode = #tpu.pipeline_mode<synchronous>, transform_indices = @transform_4, window_bounds = array<i64: 1, 8>}, {transform_indices = @transform_5, window_bounds = array<i64: 64, 8>}]} {
    %c0 = arith.constant 0 : index
    %c0_0 = arith.constant 0 : index
    %0 = vector.load %arg1[%c0, %c0_0] : memref<64x16xf32, #tpu.memory_space<vmem>>, vector<64x16xf32>
    %c0_1 = arith.constant 0 : index
    %c0_2 = arith.constant 0 : index
    %1 = vector.load %arg2[%c0_1, %c0_2] : memref<16x32xf32, #tpu.memory_space<vmem>>, vector<16x32xf32>
    %cst = arith.constant dense<0.000000e+00> : vector<64x32xf32>
    %2 = tpu.matmul %0, %1, %cst {dimension_numbers = #tpu.dot_dimension_numbers<[1], [0], [0], [1], [0, 0, 1, 1], [], []>} : vector<64x16xf32>, vector<16x32xf32>, vector<64x32xf32> -> vector<64x32xf32>
    %c0_3 = arith.constant 0 : index
    %c0_4 = arith.constant 0 : index
    %3 = vector.load %arg3[%c0_3, %c0_4] : memref<1x32xf32, #tpu.memory_space<vmem>>, vector<1x32xf32>
    %4 = vector.broadcast %3 : vector<1x32xf32> to vector<64x32xf32>
    %5 = arith.addf %2, %4 : vector<64x32xf32>
    %cst_5 = arith.constant 0.000000e+00 : f32
    %6 = vector.broadcast %cst_5 : f32 to vector<64x32xf32>
    %7 = arith.maximumf %5, %6 : vector<64x32xf32>
    %c0_6 = arith.constant 0 : index
    %c0_7 = arith.constant 0 : index
    %8 = vector.load %arg4[%c0_6, %c0_7] : memref<32x8xf32, #tpu.memory_space<vmem>>, vector<32x8xf32>
    %cst_8 = arith.constant dense<0.000000e+00> : vector<64x8xf32>
    %9 = tpu.matmul %7, %8, %cst_8 {dimension_numbers = #tpu.dot_dimension_numbers<[1], [0], [0], [1], [0, 0, 1, 1], [], []>} : vector<64x32xf32>, vector<32x8xf32>, vector<64x8xf32> -> vector<64x8xf32>
    %c0_9 = arith.constant 0 : index
    %c0_10 = arith.constant 0 : index
    %10 = vector.load %arg5[%c0_9, %c0_10] : memref<1x8xf32, #tpu.memory_space<vmem>>, vector<1x8xf32>
    %11 = vector.broadcast %10 : vector<1x8xf32> to vector<64x8xf32>
    %12 = arith.addf %9, %11 : vector<64x8xf32>
    %c0_11 = arith.constant 0 : index
    %c0_12 = arith.constant 0 : index
    %13 = vector.load %arg6[%c0_11, %c0_12] : memref<64x8xf32, #tpu.memory_space<vmem>>, vector<64x8xf32>
    tpu.vector_store %arg6[%c0_11, %c0_12], %12 {strides = array<i32>} : memref<64x8xf32, #tpu.memory_space<vmem>>, vector<64x8xf32>,
    return
  }
  func.func @transform_0(%arg0: i32) -> (i32, i32) {
    %c0_i32 = arith.constant 0 : i32
    %c0_i32_0 = arith.constant 0 : i32
    return %arg0, %c0_i32 : i32, i32
  }
  func.func @transform_1(%arg0: i32) -> (i32, i32) {
    %c0_i32 = arith.constant 0 : i32
    %c0_i32_0 = arith.constant 0 : i32
    %c0_i32_1 = arith.constant 0 : i32
    return %c0_i32, %c0_i32_0 : i32, i32
  }
  func.func @transform_2(%arg0: i32) -> (i32, i32) {
    %c0_i32 = arith.constant 0 : i32
    %c0_i32_0 = arith.constant 0 : i32
    %c0_i32_1 = arith.constant 0 : i32
    return %c0_i32, %c0_i32_0 : i32, i32
  }
  func.func @transform_3(%arg0: i32) -> (i32, i32) {
    %c0_i32 = arith.constant 0 : i32
    %c0_i32_0 = arith.constant 0 : i32
    %c0_i32_1 = arith.constant 0 : i32
    return %c0_i32, %c0_i32_0 : i32, i32
  }
  func.func @transform_4(%arg0: i32) -> (i32, i32) {
    %c0_i32 = arith.constant 0 : i32
    %c0_i32_0 = arith.constant 0 : i32
    %c0_i32_1 = arith.constant 0 : i32
    return %c0_i32, %c0_i32_0 : i32, i32
  }
  func.func @transform_5(%arg0: i32) -> (i32, i32) {
    %c0_i32 = arith.constant 0 : i32
    %c0_i32_0 = arith.constant 0 : i32
    return %arg0, %c0_i32 : i32, i32
  }
}

</mosaic_0001>

<bundles_post_ra>
// kernel: tpu_custom_call.1
= control target key start
LH: loop header
LB: loop body
LE: loop exit
PB: predicated region body
PF: predicated region fallthrough
CT: control target
= control target key end

     0   :  { %vm37_vm0 = vcmask 130048   ;;  %vm186_vm1 = vcmask 261120   ;;  %vm316_vm2 = vcmask 64512   ;;  %s543_s1 = inlined_call_operand.vmem [shape: f32[16,32], index: 1, kind: input, shape index: {}]   ;;  %s544_s0 = inlined_call_operand.vmem [shape: f32[64,16], index: 0, kind: input, shape index: {}]   ;;  %s545_s3 = inlined_call_operand.vmem [shape: f32[32,8], index: 3, kind: input, shape index: {}]   ;;  %s546_s2 = inlined_call_operand.vmem [shape: f32[1,32], index: 2, kind: input, shape index: {}]   ;;  %s547_s4 = inlined_call_operand.vmem [shape: f32[1,8], index: 4, kind: input, shape index: {}]   ;;  %s548_s5 = inlined_call_operand.vmem [shape: f32[64,8], index: 5, kind: output, shape index: {}]  }
   0x1   :  { %v28_v0 = vld [vmem:[%s543_s1] sm:$0xff]  ;;  %v29_v1 = vld [vmem:[%s543_s1 + $0x8] sm:$0xff]  ;;  %v22_v8 = vld [vmem:[%s544_s0 + $0x10] sm:$0xff] }
   0x2   :  { %v20_v2 = vld [vmem:[%s544_s0] sm:$0xff]  ;;  %v405_v3 = vpack.c.bf16 %v29_v1, %v28_v0  ;;  %v176_v5 = vld [vmem:[%s545_s3 + $0x8] sm:$0xff]  ;;  %v23_v9 = vld [vmem:[%s544_s0 + $0x18] sm:$0xff] }
   0x3   :  { %373 = vmatprep.mubr.msk.f32.mxu0 %vm37_vm0, %v20_v2  ;;  %v175_v4 = vld [vmem:[%s545_s3] sm:$0xff]  ;;  %v21_v6 = vld [vmem:[%s544_s0 + $0x8] sm:$0xff]  ;;  %v26_v12 = vld [vmem:[%s544_s0 + $0x30] sm:$0xff] }
   0x4   :  { %406 = vmatprep.subr.bf16.mxu0 %v405_v3  ;;  %v409_v7 = vpack.c.bf16 %v176_v5, %v175_v4  ;;  %v24_v10 = vld [vmem:[%s544_s0 + $0x20] sm:$0xff]  ;;  %v25_v11 = vld [vmem:[%s544_s0 + $0x28] sm:$0xff]  ;;  %v27_v13 = vld [vmem:[%s544_s0 + $0x38] sm:$0xff] }
   0x5   :  { %408 = vmatpush3.bf16.msra.mxu0 %v405_v3  ;;  %v177_v14 = vld [vmem:[%s545_s3 + $0x10] sm:$0xff]  ;;  %v178_v15 = vld [vmem:[%s545_s3 + $0x18] sm:$0xff]  ;;  %v329_v17 = vld [vmem:[%s546_s2] ss:$0 sm:$0xff] }
   0x6   :  { %410 = vmatprep.subr.bf16.mxu1 %v409_v7  ;;  %v413_v16 = vpack.c.bf16 %v178_v15, %v177_v14  ;;  %v338_v42 = vld [vmem:[%s547_s4] ss:$0 sm:$0xff] }
   0x7   :  { %412 = vmatpush3.bf16.msra.mxu1 %v409_v7 }
   0x8   :  { %374 = vmatmul.mubr.msk.f32.vlgmr.msra.gmra.mrb[0].mxu0 %vm37_vm0, %v21_v6  ;;  %414 = vmatprep.subr.bf16.mxu1 %v413_v16 }
   0x9   :  { %376 = vmatprep.mubr.msk.f32.mxu0 %vm37_vm0, %v22_v8 }
   0xb   :  { %416 = vmatpush3.bf16.msra.mxu1 %v413_v16 }
   0xc   :  { %377 = vmatmul.mubr.msk.f32.gmra.mrb[2].mxu0 %vm37_vm0, %v23_v9 }
   0xd   :  { %379 = vmatprep.mubr.msk.f32.mxu0 %vm37_vm0, %v24_v10 }
  0x10   :  { %380 = vmatmul.mubr.msk.f32.gmra.mrb[4].mxu0 %vm37_vm0, %v25_v11 }
  0x11   :  { %382 = vmatprep.mubr.msk.f32.mxu0 %vm37_vm0, %v26_v12 }
  0x14   :  { %383 = vmatmul.mubr.msk.f32.gmra.mrb[6].mxu0 %vm37_vm0, %v27_v13 }
  0xdb   :  { %v375_v18 = vpop.f32.mrb[0].mxu0 }
  0xdc   :  { %v134_v19 = vadd.f32 %v375_v18, %v329_v17  ;;  %v128_v20 = vpop.f32.mrb[1].mxu0 }
  0xdd   :  { %v129_v21 = vadd.f32 %v329_v17, %v128_v20 }
  0xde   :  { %v168_v24 = vmax.f32 %v134_v19, 0.0 }
  0xdf   :  { %v167_v22 = vmax.f32 %v129_v21, 0.0  ;;  %v378_v23 = vpop.f32.mrb[2].mxu0 }
  0xe0   :  { %v144_v25 = vadd.f32 %v378_v23, %v329_v17  ;;  %v138_v26 = vpop.f32.mrb[3].mxu0 }
  0xe1   :  { %v139_v27 = vadd.f32 %v329_v17, %v138_v26  ;;  %393 = vmatprep.mubr.msk.f32.mxu1 %vm186_vm1, %v167_v22 }
  0xe2   :  { %394 = vmatmul.mubr.msk.f32.vlgmr.msra.gmra.mrb[0].mxu1 %vm186_vm1, %v168_v24  ;;  %v170_v30 = vmax.f32 %v144_v25, 0.0 }
  0xe3   :  { %v169_v28 = vmax.f32 %v139_v27, 0.0  ;;  %v381_v29 = vpop.f32.mrb[4].mxu0 }
  0xe4   :  { %v154_v31 = vadd.f32 %v381_v29, %v329_v17  ;;  %v148_v32 = vpop.f32.mrb[5].mxu0 }
  0xe5   :  { %v149_v33 = vadd.f32 %v329_v17, %v148_v32  ;;  %396 = vmatprep.mubr.msk.f32.mxu1 %vm186_vm1, %v169_v28 }
  0xe6   :  { %397 = vmatmul.mubr.msk.f32.gmra.mrb[2].mxu1 %vm186_vm1, %v170_v30  ;;  %v172_v36 = vmax.f32 %v154_v31, 0.0 }
  0xe7   :  { %v171_v34 = vmax.f32 %v149_v33, 0.0  ;;  %v384_v35 = vpop.f32.mrb[6].mxu0 }
  0xe8   :  { %v164_v37 = vadd.f32 %v384_v35, %v329_v17  ;;  %v158_v38 = vpop.f32.mrb[7].mxu0 }
  0xe9   :  { %v159_v39 = vadd.f32 %v329_v17, %v158_v38  ;;  %399 = vmatprep.mubr.msk.f32.mxu1 %vm186_vm1, %v171_v34 }
  0xea   :  { %400 = vmatmul.mubr.msk.f32.gmra.mrb[4].mxu1 %vm186_vm1, %v172_v36  ;;  %v174_v41 = vmax.f32 %v164_v37, 0.0 }
  0xeb   :  { %v173_v40 = vmax.f32 %v159_v39, 0.0 }
  0xed   :  { %402 = vmatprep.mubr.msk.f32.mxu1 %vm186_vm1, %v173_v40 }
  0xee   :  { %403 = vmatmul.mubr.msk.f32.gmra.mrb[6].mxu1 %vm186_vm1, %v174_v41 }
 0x1b5   :  { %v395_v43 = vpop.f32.mrb[0].mxu1 }
 0x1b6   :  { %v283_v44 = vadd.f32 %v395_v43, %v338_v42  ;;  %v277_v45 = vpop.f32.mrb[1].mxu1 }
 0x1b7   :  { %v278_v46 = vadd.f32 %v338_v42, %v277_v45 }
 0x1b8   :  { %318 = vst.msk [vmem:[%s548_s5 + $0x8] sm:$0xff] %vm316_vm2, %v283_v44 }
 0x1b9   :  { %317 = vst.msk [vmem:[%s548_s5] sm:$0xff] %vm316_vm2, %v278_v46  ;;  %v398_v47 = vpop.f32.mrb[2].mxu1 }
 0x1ba   :  { %v293_v48 = vadd.f32 %v398_v47, %v338_v42  ;;  %v287_v49 = vpop.f32.mrb[3].mxu1 }
 0x1bb   :  { %v288_v50 = vadd.f32 %v338_v42, %v287_v49 }
 0x1bc   :  { %320 = vst.msk [vmem:[%s548_s5 + $0x18] sm:$0xff] %vm316_vm2, %v293_v48 }
 0x1bd   :  { %319 = vst.msk [vmem:[%s548_s5 + $0x10] sm:$0xff] %vm316_vm2, %v288_v50  ;;  %v401_v51 = vpop.f32.mrb[4].mxu1 }
 0x1be   :  { %v303_v52 = vadd.f32 %v401_v51, %v338_v42  ;;  %v297_v53 = vpop.f32.mrb[5].mxu1 }
 0x1bf   :  { %v298_v54 = vadd.f32 %v338_v42, %v297_v53 }
 0x1c0   :  { %322 = vst.msk [vmem:[%s548_s5 + $0x28] sm:$0xff] %vm316_vm2, %v303_v52 }
 0x1c1   :  { %321 = vst.msk [vmem:[%s548_s5 + $0x20] sm:$0xff] %vm316_vm2, %v298_v54  ;;  %v404_v55 = vpop.f32.mrb[6].mxu1 }
 0x1c2   :  { %v313_v56 = vadd.f32 %v404_v55, %v338_v42  ;;  %v307_v57 = vpop.f32.mrb[7].mxu1 }
 0x1c3   :  { %v308_v58 = vadd.f32 %v338_v42, %v307_v57 }
 0x1c4   :  { %324 = vst.msk [vmem:[%s548_s5 + $0x38] sm:$0xff] %vm316_vm2, %v313_v56 }
 0x1c5   :  { %323 = vst.msk [vmem:[%s548_s5 + $0x30] sm:$0xff] %vm316_vm2, %v308_v58 }

</bundles_post_ra>
